<compile_context>
chip_gen: v7x
topology: tpu7x:2x2x1
jax: 0.10.0
libtpu: 0.0.40
codegen_flags: <defaults>
</compile_context>

<pallas_src>
import jax
import jax.numpy as jnp
from jax import lax
from jax.experimental import pallas as pl
from jax.experimental.pallas import tpu as pltpu

EPS = 1e-5


def _bnfc_kernel(x_ref, w1_ref, w2_ref, pp_ref, o_ref):
    h2 = w2_ref.shape[1]

    x = x_ref[...]
    pp = pp_ref[...]

    # Packed-parameter layout (rows of a (16, H1) f32 tile):
    #   0: gamma1   1: beta1   2: gamma2 (lanes :H2)   3: beta2 (lanes :H2)
    #   4: [b3, 0, ...]        8..15: w3 block, row 8 = w3, rows 9..15 zero
    g1, be1 = pp[0:1, :], pp[1:2, :]
    g2, be2 = pp[2:3, :h2], pp[3:4, :h2]
    b3 = pp[4:5, 0:1]
    w3blk = pp[8:16, :h2]                                  # (8, H2)

    # ---- Linear 1 (bias dropped: cancels under batch-mean subtraction) ----
    h = jnp.dot(x, w1_ref[...], preferred_element_type=jnp.float32)
    mean = jnp.mean(h, axis=0, keepdims=True)
    d = h - mean
    var = jnp.mean(d * d, axis=0, keepdims=True)           # biased variance
    scale = g1 * lax.rsqrt(var + EPS)                      # EUP, (1, H1)
    shift = be1 - mean * scale
    h = jnp.maximum(h * scale + shift, 0.0)                # fused BN + ReLU

    # ---- Linear 2 (bias dropped) ----
    h = jnp.dot(h, w2_ref[...], preferred_element_type=jnp.float32)
    mean = jnp.mean(h, axis=0, keepdims=True)
    d = h - mean
    var = jnp.mean(d * d, axis=0, keepdims=True)
    scale = g2 * lax.rsqrt(var + EPS)
    shift = be2 - mean * scale
    h = jnp.maximum(h * scale + shift, 0.0)

    # ---- Linear 3, lane-dense (1, N) output ----
    # (8, H2) @ (N, H2)^T -> (8, N); only row 0 is real (rows 1..7 of w3blk = 0).
    outs = lax.dot_general(w3blk, h, (((1,), (1,)), ((), ())),
                           preferred_element_type=jnp.float32)
    o_ref[...] = (outs[0:1, :] + b3).astype(o_ref.dtype)


def _pack_params(params, input_size):
    """Pack the small per-feature params into one (16, H1) f32 array."""
    h1, h2 = input_size // 2, input_size // 4
    pp = jnp.zeros((16, h1), jnp.float32)
    pp = pp.at[0, :].set(params["g1"][0])
    pp = pp.at[1, :].set(params["be1"][0])
    pp = pp.at[2, :h2].set(params["g2"][0])
    pp = pp.at[3, :h2].set(params["be2"][0])
    pp = pp.at[4, 0].set(params["b3"][0, 0])
    pp = pp.at[8, :h2].set(params["w3"][:, 0])
    return pp


@jax.jit
def bnfc_forward(x, params):
    """x: (N, input_size) float32. Returns (N, 1) float32."""
    n, input_size = x.shape
    pp = _pack_params(params, input_size)
    # Small problem: everything fits in VMEM, no grid / tiling needed.
    # TODO(synk): for large N/F, switch to a batch-tiled grid with two-pass BN
    # (per-tile sum/sumsq accumulation) sized for 64 MiB VMEM on v7x.
    vmem = pl.BlockSpec(memory_space=pltpu.VMEM)
    out_row = pl.pallas_call(
        _bnfc_kernel,
        out_shape=jax.ShapeDtypeStruct((1, n), jnp.float32),
        in_specs=[vmem, vmem, vmem, vmem],
        out_specs=vmem,
    )(x, params["w1"], params["w2"], pp)
    return out_row.reshape(n, 1)


def init_params(key, input_size):
    """PyTorch-default-style init. Linear weights stored pre-transposed (in, out).

    b1/b2 are kept here (and in the reference) for module parity even though
    the kernel omits them (they cancel under training-mode BN).
    """
    h1, h2 = input_size // 2, input_size // 4
    keys = jax.random.split(key, 6)

    def linear(kw, kb, fan_in, fan_out):
        bound = 1.0 / jnp.sqrt(fan_in)
        w = jax.random.uniform(kw, (fan_in, fan_out), jnp.float32, -bound, bound)
        b = jax.random.uniform(kb, (1, fan_out), jnp.float32, -bound, bound)
        return w, b

    w1, b1 = linear(keys[0], keys[1], input_size, h1)
    w2, b2 = linear(keys[2], keys[3], h1, h2)
    w3, b3 = linear(keys[4], keys[5], h2, 1)

    return {
        "w1": w1, "b1": b1,
        "g1": jnp.ones((1, h1), jnp.float32), "be1": jnp.zeros((1, h1), jnp.float32),
        "w2": w2, "b2": b2,
        "g2": jnp.ones((1, h2), jnp.float32), "be2": jnp.zeros((1, h2), jnp.float32),
        "w3": w3, "b3": b3,
    }


def bnfc_reference(x, p):
    """Pure-JAX reference with the full (bias-included) PyTorch semantics."""
    h = x @ p["w1"] + p["b1"]
    m, v = jnp.mean(h, 0, keepdims=True), jnp.var(h, 0, keepdims=True)
    h = jnp.maximum((h - m) / jnp.sqrt(v + EPS) * p["g1"] + p["be1"], 0.0)
    h = h @ p["w2"] + p["b2"]
    m, v = jnp.mean(h, 0, keepdims=True), jnp.var(h, 0, keepdims=True)
    h = jnp.maximum((h - m) / jnp.sqrt(v + EPS) * p["g2"] + p["be2"], 0.0)
    return h @ p["w3"] + p["b3"]


if __name__ == "__main__":
    key = jax.random.PRNGKey(0)
    k_x, k_p = jax.random.split(key)

    batch = 8
    input_size = 32  # hidden sizes: 16, 8, output 1

    x = jax.random.normal(k_x, (batch, input_size), jnp.float32)
    params = init_params(k_p, input_size)

    out = bnfc_forward(x, params)
    out = jax.block_until_ready(out)

    ref = bnfc_reference(x, params)
    assert out.shape == (batch, 1), out.shape
    assert jnp.allclose(out, ref, atol=1e-5, rtol=1e-5), (out, ref)

    print("KERNEL_OK")
</pallas_src>

<mosaic_0001>
module attributes {stable_mosaic.version = 11 : i64} {
  func.func @_bnfc_kernel(%arg0: memref<8x32xf32, #tpu.memory_space<vmem>>, %arg1: memref<32x16xf32, #tpu.memory_space<vmem>>, %arg2: memref<16x8xf32, #tpu.memory_space<vmem>>, %arg3: memref<16x16xf32, #tpu.memory_space<vmem>>, %arg4: memref<1x8xf32, #tpu.memory_space<vmem>>) attributes {dimension_semantics = [], scalar_prefetch = 0 : i64, scratch_operands = 0 : i64, tpu.core_type = #tpu.core_type<tc>} {
    %c0 = arith.constant 0 : index
    %c0_0 = arith.constant 0 : index
    %0 = vector.load %arg0[%c0, %c0_0] : memref<8x32xf32, #tpu.memory_space<vmem>>, vector<8x32xf32>
    %c0_1 = arith.constant 0 : index
    %c0_2 = arith.constant 0 : index
    %1 = vector.load %arg3[%c0_1, %c0_2] : memref<16x16xf32, #tpu.memory_space<vmem>>, vector<16x16xf32>
    %2 = vector.extract_strided_slice %1 {offsets = [0, 0], sizes = [1, 16], strides = [1, 1]} : vector<16x16xf32> to vector<1x16xf32>
    %3 = vector.extract_strided_slice %1 {offsets = [1, 0], sizes = [1, 16], strides = [1, 1]} : vector<16x16xf32> to vector<1x16xf32>
    %4 = vector.extract_strided_slice %1 {offsets = [2, 0], sizes = [1, 8], strides = [1, 1]} : vector<16x16xf32> to vector<1x8xf32>
    %5 = vector.extract_strided_slice %1 {offsets = [3, 0], sizes = [1, 8], strides = [1, 1]} : vector<16x16xf32> to vector<1x8xf32>
    %6 = vector.extract_strided_slice %1 {offsets = [4, 0], sizes = [1, 1], strides = [1, 1]} : vector<16x16xf32> to vector<1x1xf32>
    %7 = vector.extract_strided_slice %1 {offsets = [8, 0], sizes = [8, 8], strides = [1, 1]} : vector<16x16xf32> to vector<8x8xf32>
    %c0_3 = arith.constant 0 : index
    %c0_4 = arith.constant 0 : index
    %8 = vector.load %arg1[%c0_3, %c0_4] : memref<32x16xf32, #tpu.memory_space<vmem>>, vector<32x16xf32>
    %cst = arith.constant dense<0.000000e+00> : vector<8x16xf32>
    %9 = tpu.matmul %0, %8, %cst {dimension_numbers = #tpu.dot_dimension_numbers<[1], [0], [0], [1], [0, 0, 1, 1], [], []>} : vector<8x32xf32>, vector<32x16xf32>, vector<8x16xf32> -> vector<8x16xf32>
    %cst_5 = arith.constant dense<0.000000e+00> : vector<16xf32>
    %10 = vector.multi_reduction <add>, %9, %cst_5 [0] : vector<8x16xf32> to vector<16xf32>
    %11 = vector.shape_cast %10 : vector<16xf32> to vector<1x16xf32>
    %cst_6 = arith.constant 8.000000e+00 : f32
    %12 = vector.broadcast %cst_6 : f32 to vector<1x16xf32>
    %13 = arith.divf %11, %12 : vector<1x16xf32>
    %14 = vector.broadcast %13 : vector<1x16xf32> to vector<8x16xf32>
    %15 = arith.subf %9, %14 : vector<8x16xf32>
    %16 = arith.mulf %15, %15 : vector<8x16xf32>
    %cst_7 = arith.constant dense<0.000000e+00> : vector<16xf32>
    %17 = vector.multi_reduction <add>, %16, %cst_7 [0] : vector<8x16xf32> to vector<16xf32>
    %18 = vector.shape_cast %17 : vector<16xf32> to vector<1x16xf32>
    %cst_8 = arith.constant 8.000000e+00 : f32
    %19 = vector.broadcast %cst_8 : f32 to vector<1x16xf32>
    %20 = arith.divf %18, %19 : vector<1x16xf32>
    %cst_9 = arith.constant 9.99999974E-6 : f32
    %21 = vector.broadcast %cst_9 : f32 to vector<1x16xf32>
    %22 = arith.addf %20, %21 : vector<1x16xf32>
    %23 = math.rsqrt %22 : vector<1x16xf32>
    %24 = arith.mulf %2, %23 : vector<1x16xf32>
    %25 = arith.mulf %13, %24 : vector<1x16xf32>
    %26 = arith.subf %3, %25 : vector<1x16xf32>
    %27 = vector.broadcast %24 : vector<1x16xf32> to vector<8x16xf32>
    %28 = arith.mulf %9, %27 : vector<8x16xf32>
    %29 = vector.broadcast %26 : vector<1x16xf32> to vector<8x16xf32>
    %30 = arith.addf %28, %29 : vector<8x16xf32>
    %cst_10 = arith.constant 0.000000e+00 : f32
    %31 = vector.broadcast %cst_10 : f32 to vector<8x16xf32>
    %32 = arith.maximumf %30, %31 : vector<8x16xf32>
    %c0_11 = arith.constant 0 : index
    %c0_12 = arith.constant 0 : index
    %33 = vector.load %arg2[%c0_11, %c0_12] : memref<16x8xf32, #tpu.memory_space<vmem>>, vector<16x8xf32>
    %cst_13 = arith.constant dense<0.000000e+00> : vector<8x8xf32>
    %34 = tpu.matmul %32, %33, %cst_13 {dimension_numbers = #tpu.dot_dimension_numbers<[1], [0], [0], [1], [0, 0, 1, 1], [], []>} : vector<8x16xf32>, vector<16x8xf32>, vector<8x8xf32> -> vector<8x8xf32>
    %cst_14 = arith.constant dense<0.000000e+00> : vector<8xf32>
    %35 = vector.multi_reduction <add>, %34, %cst_14 [0] : vector<8x8xf32> to vector<8xf32>
    %36 = vector.shape_cast %35 : vector<8xf32> to vector<1x8xf32>
    %cst_15 = arith.constant 8.000000e+00 : f32
    %37 = vector.broadcast %cst_15 : f32 to vector<1x8xf32>
    %38 = arith.divf %36, %37 : vector<1x8xf32>
    %39 = vector.broadcast %38 : vector<1x8xf32> to vector<8x8xf32>
    %40 = arith.subf %34, %39 : vector<8x8xf32>
    %41 = arith.mulf %40, %40 : vector<8x8xf32>
    %cst_16 = arith.constant dense<0.000000e+00> : vector<8xf32>
    %42 = vector.multi_reduction <add>, %41, %cst_16 [0] : vector<8x8xf32> to vector<8xf32>
    %43 = vector.shape_cast %42 : vector<8xf32> to vector<1x8xf32>
    %cst_17 = arith.constant 8.000000e+00 : f32
    %44 = vector.broadcast %cst_17 : f32 to vector<1x8xf32>
    %45 = arith.divf %43, %44 : vector<1x8xf32>
    %cst_18 = arith.constant 9.99999974E-6 : f32
    %46 = vector.broadcast %cst_18 : f32 to vector<1x8xf32>
    %47 = arith.addf %45, %46 : vector<1x8xf32>
    %48 = math.rsqrt %47 : vector<1x8xf32>
    %49 = arith.mulf %4, %48 : vector<1x8xf32>
    %50 = arith.mulf %38, %49 : vector<1x8xf32>
    %51 = arith.subf %5, %50 : vector<1x8xf32>
    %52 = vector.broadcast %49 : vector<1x8xf32> to vector<8x8xf32>
    %53 = arith.mulf %34, %52 : vector<8x8xf32>
    %54 = vector.broadcast %51 : vector<1x8xf32> to vector<8x8xf32>
    %55 = arith.addf %53, %54 : vector<8x8xf32>
    %cst_19 = arith.constant 0.000000e+00 : f32
    %56 = vector.broadcast %cst_19 : f32 to vector<8x8xf32>
    %57 = arith.maximumf %55, %56 : vector<8x8xf32>
    %cst_20 = arith.constant dense<0.000000e+00> : vector<8x8xf32>
    %58 = tpu.matmul %7, %57, %cst_20 {dimension_numbers = #tpu.dot_dimension_numbers<[1], [1], [0], [0], [0, 0, 1, 0], [], []>} : vector<8x8xf32>, vector<8x8xf32>, vector<8x8xf32> -> vector<8x8xf32>
    %59 = vector.extract_strided_slice %58 {offsets = [0, 0], sizes = [1, 8], strides = [1, 1]} : vector<8x8xf32> to vector<1x8xf32>
    %60 = vector.broadcast %6 : vector<1x1xf32> to vector<1x8xf32>
    %61 = arith.addf %59, %60 : vector<1x8xf32>
    %c0_21 = arith.constant 0 : index
    %c0_22 = arith.constant 0 : index
    %62 = vector.load %arg4[%c0_21, %c0_22] : memref<1x8xf32, #tpu.memory_space<vmem>>, vector<1x8xf32>
    tpu.vector_store %arg4[%c0_21, %c0_22], %61 {strides = array<i32>} : memref<1x8xf32, #tpu.memory_space<vmem>>, vector<1x8xf32>,
    return
  }
}

</mosaic_0001>

<bundles_post_ra>
// kernel: bnfc_forward.1
= control target key start
LH: loop header
LB: loop body
LE: loop exit
PB: predicated region body
PF: predicated region fallthrough
CT: control target
= control target key end

     0   :  { %v430_v3 = vmov 0.0|0.0   ;;  %vm431_vm0 = vmmov 0   ;;  %v432_v6 = vmov 0.0   ;;  %s509_s0 = inlined_call_operand.vmem [shape: f32[8,32], index: 0, kind: input, shape index: {}]   ;;  %s510_s1 = inlined_call_operand.vmem [shape: f32[32,16], index: 1, kind: input, shape index: {}]   ;;  %s511_s2 = inlined_call_operand.vmem [shape: f32[16,8], index: 2, kind: input, shape index: {}]   ;;  %s512_s3 = inlined_call_operand.vmem [shape: f32[16,16], index: 3, kind: input, shape index: {}]   ;;  %s513_s4 = inlined_call_operand.hbm [shape: f32[1,8], index: 4, kind: output, shape index: {}]  }
   0x1   :  { %v21_v0 = vld [vmem:[%s510_s1] sm:$0xff]  ;;  %v22_v1 = vld [vmem:[%s510_s1 + $0x8] sm:$0xff]  ;;  %v23_v2 = vld [vmem:[%s510_s1 + $0x10] sm:$0xff]  ;;  %387 = vmatprep.subr.bf16.mxu0 %v430_v3  ;;  %372 = vmatprep.mubr.msk.f32.mxu0 %vm431_vm0, %v432_v6 }
   0x2   :  { %v388_v4 = vpack.c.bf16 %v22_v1, %v21_v0  ;;  %v24_v5 = vld [vmem:[%s510_s1 + $0x18] sm:$0xff]  ;;  %393 = vmatprep.subr.bf16.mxu1 %v430_v3  ;;  %379 = vmatprep.mubr.msk.f32.mxu1 %vm431_vm0, %v432_v6 }
   0x3   :  { %9 = vsyncpa [#allocation3], 0  ;;  %v391_v7 = vpack.c.bf16 %v24_v5, %v23_v2  ;;  %v18_v8 = vld [vmem:[%s509_s0] sm:$0xff]  ;;  %vm25_vm1 = vcmask 261120   ;;  %v139_v10 = vld [vmem:[%s511_s2 + $0x8] sm:$0xff]  ;;  %vm99_vm2 = vcmask 130048   ;;  %v127_v33 = vlaneseq }
   0x4   :  { %389 = vmatpush3.bf16.msra.mxu0 %v388_v4  ;;  %v138_v9 = vld [vmem:[%s511_s2] sm:$0xff]  ;;  %v433_v48 = vmov 0   ;;  %vm213_vm3 = vcmask 64512   ;;  %s434_s30 = smov [#allocation2]   ;;  %vm334_vm4 = vcmask 57344  }
   0x5   :  { %390 = vmatprep.subr.bf16.mxu0 %v430_v3  ;;  %v394_v11 = vpack.c.bf16 %v139_v10, %v138_v9  ;;  %v128_v34 = vshrl.u32 %v127_v33, 7  ;;  %v19_v35 = vld [vmem:[%s512_s3] sm:$0xff]  ;;  %401 = vset.pattern.permute.xlu0 %v433_v48  ;;  %s342_s5 = sshll.u32 %s434_s30, 4  ;;  %s343_s5 = int_to_ptr.vmem [resolvable:$true] %s342_s5 }
   0x6   :  { %329 = vperm.xlu0 %401, %v19_v35   ;;  %s406_s6 = scalar_lea.vmem %s343_s5, 16  ;;  %s410_s7 = scalar_lea.vmem %s343_s5, 32 }
   0x7   :  { %395 = vmatpush3.bf16.msra.mxu1 %v394_v11  ;;  %v129_v38 = vsub.s32 0, %v128_v34  ;;  %v134_v42 = vsub.s32 1, %v128_v34  ;;  %p407_p0 = scmp.ne.s32.totalorder %s343_s5, %s406_s6  ;;  %p411_p1 = scmp.lt.s32.totalorder %s343_s5, %s343_s5 }
   0x8   :  { %392 = vmatpush3.bf16.msra.mxu0 %v391_v7  ;;  %382 = vmatprep.subr.mxu1 %v432_v6  ;;  %p412_p2 = scmp.lt.s32.totalorder %s410_s7, %s406_s6 }
   0xa   :  { %p413_p3 = por %p412_p2, %p411_p1 }
   0xb   :  { %373 = vmatmul.mubr.msk.f32.vlgmr.msra.gmra.mrb[0].mxu0 %vm25_vm1, %v18_v8  ;;  %v242_v8 = vsub.s32 2, %v128_v34 }
   0xc   :  { %p414_p4 = pnand %p413_p3, %p407_p0 }
  0xde   :  { %v95_v12 = vpop.f32.mrb[0].mxu0 }
  0xdf   :  { %v100_v13 = vsel %vm99_vm2, %v95_v12, 0.0  ;;  %v374_v14 = vpop.f32.mrb[1].mxu0 }
  0xe0   :  { %v101_v15 = vrot.slane %v100_v13, 4 }
  0xe2   :  { %v102_v16 = vadd.f32 %v101_v15, %v100_v13 }
  0xe4   :  { %v103_v17 = vrot.slane %v102_v16, 2 }
  0xe6   :  { %v104_v18 = vadd.f32 %v103_v17, %v102_v16 }
  0xe8   :  { %v105_v19 = vrot.slane %v104_v18, 1 }
  0xea   :  { %v106_v20 = vadd.f32 %v105_v19, %v104_v18  ;;  %v20_v18 = vld [vmem:[%s512_s3 + $0x8] sm:$0xff]  ;;  %v330_v19 = vpop.permute.xlu0 %329 }
  0xec   :  { %v108_v21 = vmul.f32 0.125, %v106_v20  ;;  %v331_v20 = vrot.slane %v330_v19, 4 }
  0xee   :  { %v109_v22 = vsub.f32 %v95_v12, %v108_v21 }
  0xf0   :  { %v110_v23 = vmul.f32 %v109_v22, %v109_v22 }
  0xf2   :  { %v111_v24 = vsel %vm99_vm2, %v110_v23, 0.0 }
  0xf3   :  { %v112_v25 = vrot.slane %v111_v24, 4 }
  0xf5   :  { %v113_v26 = vadd.f32 %v112_v25, %v111_v24 }
  0xf7   :  { %v114_v27 = vrot.slane %v113_v26, 2 }
  0xf9   :  { %v115_v28 = vadd.f32 %v114_v27, %v113_v26 }
  0xfb   :  { %v116_v29 = vrot.slane %v115_v28, 1 }
  0xfd   :  { %v117_v30 = vadd.f32 %v116_v29, %v115_v28 }
  0xff   :  { %v118_v31 = vmul.f32 0.125, %v117_v30 }
 0x101   :  { %v119_v32 = vadd.f32 1e-05, %v118_v31 }
 0x103   :  { %402 = vrsqrt.f32 %v119_v32 }
 0x10d   :  { %v403_v36 = vpop.eup %402 }
 0x10e   :  { %v121_v37 = vmul.f32 %v403_v36, %v19_v35 }
 0x110   :  { %v122_v39 = vmul.f32 %v121_v37, %v108_v21  ;;  %v130_v41 = vrot.slane %v121_v37, %v129_v38 }
 0x112   :  { %v124_v40 = vrot.slane %v122_v39, 7  ;;  %v131_v44 = vmul.f32 %v130_v41, %v95_v12  ;;  %v247_v12 = vsub.s32 3, %v128_v34 }
 0x114   :  { %v126_v43 = vsub.f32 %v19_v35, %v124_v40 }
 0x116   :  { %v135_v45 = vrot.slane %v126_v43, %v134_v42 }
 0x118   :  { %v136_v46 = vadd.f32 %v135_v45, %v131_v44 }
 0x11a   :  { %v137_v47 = vmax.f32 %v136_v46, 0.0 }
 0x11c   :  { %380 = vmatmul.mubr.msk.f32.vlgmr.msra.gmra.mrb[0].mxu1 %vm99_vm2, %v137_v47 }
 0x11d   :  { %384 = vmatprep.mubr.msk.f32.mxu1 %vm431_vm0, %v432_v6 }
 0x1ef   :  { %v209_v49 = vpop.f32.mrb[0].mxu1 }
 0x1f0   :  { %v214_v50 = vsel %vm213_vm3, %v209_v49, 0.0  ;;  %v381_v51 = vpop.f32.mrb[1].mxu1 }
 0x1f1   :  { %v215_v52 = vrot.slane %v214_v50, 4 }
 0x1f3   :  { %v216_v53 = vadd.f32 %v215_v52, %v214_v50 }
 0x1f5   :  { %v217_v54 = vrot.slane %v216_v53, 2 }
 0x1f7   :  { %v218_v55 = vadd.f32 %v217_v54, %v216_v53 }
 0x1f9   :  { %v219_v56 = vrot.slane %v218_v55, 1 }
 0x1fb   :  { %v220_v57 = vadd.f32 %v219_v56, %v218_v55 }
 0x1fd   :  { %v221_v58 = vmul.f32 0.125, %v220_v57 }
 0x1ff   :  { %v222_v59 = vsub.f32 %v209_v49, %v221_v58 }
 0x201   :  { %v223_v60 = vmul.f32 %v222_v59, %v222_v59 }
 0x203   :  { %v224_v61 = vsel %vm213_vm3, %v223_v60, 0.0 }
 0x204   :  { %v225_v62 = vrot.slane %v224_v61, 4 }
 0x206   :  { %v226_v63 = vadd.f32 %v225_v62, %v224_v61 }
 0x208   :  { %v227_v0 = vrot.slane %v226_v63, 2 }
 0x20a   :  { %v228_v1 = vadd.f32 %v227_v0, %v226_v63 }
 0x20c   :  { %v229_v2 = vrot.slane %v228_v1, 1 }
 0x20e   :  { %v230_v3 = vadd.f32 %v229_v2, %v228_v1 }
 0x210   :  { %v231_v4 = vmul.f32 0.125, %v230_v3 }
 0x212   :  { %v232_v5 = vadd.f32 1e-05, %v231_v4 }
 0x214   :  { %404 = vrsqrt.f32 %v232_v5 }
 0x21e   :  { %v405_v6 = vpop.eup %404 }
 0x21f   :  { %v234_v7 = vmul.f32 %v405_v6, %v19_v35 }
 0x221   :  { %v235_v9 = vmul.f32 %v234_v7, %v221_v58  ;;  %v243_v11 = vrot.slane %v234_v7, %v242_v8 }
 0x223   :  { %v237_v10 = vrot.slane %v235_v9, 7  ;;  %v244_v14 = vmul.f32 %v243_v11, %v209_v49 }
 0x225   :  { %v239_v13 = vsub.f32 %v19_v35, %v237_v10 }
 0x227   :  { %v248_v15 = vrot.slane %v239_v13, %v247_v12 }
 0x229   :  { %v249_v16 = vadd.f32 %v248_v15, %v244_v14 }
 0x22b   :  { %v250_v17 = vmax.f32 %v249_v16, 0.0 }
 0x22d   :  { %383 = vmatpush3.xpose.msk.msra.mxu1 %vm213_vm3, %v250_v17 }
 0x230   :  { %385 = vmatmul.mubr.msk.f32.vlgmr.msra.gmra.mrb[2].mxu1 %vm213_vm3, %v20_v18 }
 0x303   :  { %v323_v21 = vpop.f32.mrb[2].mxu1 }
 0x304   :  { %v333_v22 = vadd.f32 %v331_v20, %v323_v21  ;;  %v386_v23 = vpop.f32.mrb[3].mxu1 }
 0x306   :  { %335 = vst.msk [vmem:[#allocation2] sm:$0x1] %vm334_vm4, %v333_v22 }
 0x307   :  { %417 = shalt.err (!%p414_p4)
}
 0x308   :  { %s418_s9 = scalar_lea.hbm %s513_s4, 16 }
 0x309   :  { %p419_p5 = scmp.ne.s32.totalorder %s513_s4, %s418_s9  ;;  %p422_p6 = scmp.lt.u32.totalorder %s418_s9, %s513_s4 }
 0x30b   :  { %p424_p7 = pnand %p422_p6, %p419_p5 }
 0x30d   :  { %427 = shalt.err (!%p424_p7)
}
 0x30e   :  { %345 = dma.vmem_to_hbm [thread:$0]  %s343_s5, 16, %s513_s4, [#allocation3]  }
 0x30f   :  { %428 = dma.done.wait [#allocation3], 16  }
 0x310   :  { %429 = vsyncadd [#allocation3], 4294967280 }
 0x311   :  { %349 = vsyncpa [#allocation3], 1 }

</bundles_post_ra>
